<compile_context>
chip_gen: v5e
topology: v5e:2x2
jax: 0.10.0
libtpu: 0.0.40
codegen_flags: <defaults>
</compile_context>

<pallas_src>
import numpy as np
import jax
import jax.numpy as jnp
from jax.experimental import pallas as pl
from jax.experimental.pallas import tpu as pltpu


def _round_up(x, m):
    return ((x + m - 1) // m) * m


def _tens_delta_kernel(x_ref, w_ref, o_ref):
    # x_ref: (bm, Kdim)   rows = flattened batch positions, cols = (dim_in, t) flat
    # w_ref: (Kdim, bn)   expanded-weight column block
    # o_ref: (bm, bn)     already in final (O, t..., i, j) flat memory order
    o_ref[...] = jnp.dot(
        x_ref[...], w_ref[...], preferred_element_type=jnp.float32
    ).astype(o_ref.dtype)


def make_tens_delta(W, inds, *, block_m=2048, n_block_max=2048,
                    use_bf16=False, vmem_budget_bytes=None):
    """Build a TensDelta forward callable.

    The 9*T^2-expanded weight is computed ONCE here (outside the hot path) and
    reused by every forward call, removing the per-call HBM write + re-read of
    the inflated weight.  `use_bf16=True` runs the MXU dot in bf16 (f32
    accumulate) -- faster but ~1e-2 relative precision vs. the f32 reference.
    """
    W = jnp.asarray(W)
    dim_out, dim_in = W.shape
    w_dtype = W.dtype
    T = 3 ** inds
    Kdim = dim_in * T           # contraction width seen by the MXU
    Ndim = dim_out * T * 9      # flat output width, order (o, t, i, j)

    compute_dtype = jnp.bfloat16 if use_bf16 else jnp.float32
    itemsize = jnp.dtype(compute_dtype).itemsize
    sub_c = 32 // itemsize      # sublane packing multiple for the compute dtype

    # ---- one-time expanded-weight construction (cached across calls) -------
    # W_big[i*T + t, (o*T + t')*9 + k] = W[o, i] * delta_{t,t'} * eye3[k]
    eye3 = jnp.eye(3, dtype=jnp.float32).reshape(9)
    eyeT = jnp.eye(T, dtype=jnp.float32)
    W_big = jnp.einsum('OI,tu,k->ItOuk', W.astype(jnp.float32), eyeT, eye3)
    W_big = W_big.reshape(Kdim, Ndim).astype(compute_dtype)

    # ---- N tiling: lane-dense single block when it fits, else 128-multiple
    #      column chunks (streams the weight, bounds the output block) --------
    if Ndim <= n_block_max:
        bn, n_blocks, N_pad = Ndim, 1, Ndim
    else:
        n_blocks = pl.cdiv(Ndim, n_block_max)
        bn = _round_up(pl.cdiv(Ndim, n_blocks), 128)
        N_pad = bn * n_blocks
        W_big = jnp.pad(W_big, ((0, 0), (0, N_pad - Ndim)))   # one-time cost
    W_big = jax.device_put(W_big)
    weight_bytes = Kdim * bn * itemsize

    # Single-buffer the weight when its index map is constant and the copy is
    # big enough to matter (saves a full Kdim x bn VMEM copy on v7x).
    single_buffer_w = bool(n_blocks == 1 and weight_bytes >= (2 << 20))
    w_bufs = 1 if single_buffer_w else 2

    def _weight_spec():
        if single_buffer_w:
            try:
                return pl.BlockSpec((Kdim, bn), lambda i, j: (0, j),
                                    pipeline_mode=pl.Buffered(1))
            except TypeError:   # older jax without pipeline_mode kwarg
                pass
        return pl.BlockSpec((Kdim, bn), lambda i, j: (0, j))

    # ---- VMEM budget (v7x: 64 MiB physical; v5e/v6e: 128 MiB) ---------------
    if vmem_budget_bytes is None:
        try:
            info = pltpu.get_tpu_info()
            phys = int(getattr(info, "vmem_capacity_bytes", 64 << 20))
        except Exception:
            phys = 64 << 20     # conservative: assume v7x-sized VMEM
        vmem_budget_bytes = int(phys * 0.7)

    def _vmem_need(bm_):
        return (2 * bm_ * Kdim * itemsize        # x block, double-buffered
                + w_bufs * Kdim * bn * itemsize  # weight block(s)
                + 2 * bm_ * bn * 4)              # output block (<= f32), x2

    @jax.jit
    def forward(x):
        assert x.ndim >= inds + 1 and x.shape[x.ndim - inds - 1] == dim_in, \
            "expected x of shape (*rest, dim_in" + ", 3" * inds + ")"
        rest = x.shape[:x.ndim - inds - 1]
        out_dtype = jnp.result_type(x.dtype, w_dtype)
        out_shape = (*rest, dim_out, *([3] * inds), 3, 3)
        R = int(np.prod(rest)) if rest else 1
        if R == 0:
            return jnp.zeros(out_shape, dtype=out_dtype)

        # Contiguous reshape only (no transpose): column order (dim_in, t)
        # matches W_big's row order.
        x2d = x.reshape(R, Kdim).astype(compute_dtype)

        # Row-block selection: sublane-aligned, capped by data size and VMEM
        # budget, split so the grid has >= 2 steps (keeps both v7x TCs busy).
        sub = max(sub_c, 32 // jnp.dtype(out_dtype).itemsize)
        bm = max(sub, min(int(block_m), _round_up(R, sub)))
        if n_blocks * pl.cdiv(R, bm) < 2 and R > sub:
            bm = _round_up(pl.cdiv(R, 2), sub)
        while _vmem_need(bm) > vmem_budget_bytes and bm > sub:
            bm = max(sub, _round_up(bm // 2, sub))

        m_blocks = pl.cdiv(R, bm)
        M_pad = m_blocks * bm
        if M_pad != R:
            x2d = jnp.pad(x2d, ((0, M_pad - R), (0, 0)))

        # Explicit limit: covers the working set with margin, never relies on
        # the generation-specific scoped default (16 MiB on v5e).
        vmem_limit = int(min(max(int(_vmem_need(bm) * 1.5) + (4 << 20),
                                 16 << 20), 112 << 20))

        out = pl.pallas_call(
            _tens_delta_kernel,
            out_shape=jax.ShapeDtypeStruct((M_pad, N_pad), out_dtype),
            grid=(m_blocks, n_blocks),
            in_specs=[
                pl.BlockSpec((bm, Kdim), lambda i, j: (i, 0)),
                _weight_spec(),
            ],
            out_specs=pl.BlockSpec((bm, bn), lambda i, j: (i, j)),
            compiler_params=pltpu.CompilerParams(
                dimension_semantics=("parallel", "parallel"),
                vmem_limit_bytes=vmem_limit,
            ),
        )(x2d, W_big)

        # Kernel already wrote the final memory order: slice off padding and do
        # a contiguous reshape only.
        return out[:R, :Ndim].reshape(out_shape)

    return forward


def tens_delta(x, W, inds, **kwargs):
    """One-shot convenience wrapper.  Prefer make_tens_delta() for repeated
    calls with the same W (reuses the cached expanded weight)."""
    return make_tens_delta(W, inds, **kwargs)(x)


def tens_delta_reference(x, W, inds):
    """Pure-JAX reference matching the PyTorch einsum path."""
    tens_idx = ''.join(chr(ord('i') + n) for n in range(inds))
    y = jnp.einsum(f'OI, ...I{tens_idx} -> ...O{tens_idx}', W, x)
    return y[..., None, None] * jnp.eye(3, dtype=y.dtype)


if __name__ == "__main__":
    # TensDelta(inds=1, dim_in=32, dim_out=16) on x: (batch=2, seq=8, 32, 3)
    inds, dim_in, dim_out = 1, 32, 16
    rest = (2, 8)

    key = jax.random.PRNGKey(0)
    kw, kx = jax.random.split(key)
    # deterministic init matching nn.init.normal_(W, std=fan_in**-0.5)
    W = (jax.random.normal(kw, (dim_out, dim_in), dtype=jnp.float32)
         * dim_in ** (-0.5))
    x = jax.random.normal(kx, (*rest, dim_in, *([3] * inds)), dtype=jnp.float32)

    fwd = make_tens_delta(W, inds)            # expanded weight built once here
    out = jax.block_until_ready(fwd(x))
    out = jax.block_until_ready(fwd(x))       # second call reuses cached weight

    ref = tens_delta_reference(x, W, inds)
    assert out.shape == (*rest, dim_out, *([3] * inds), 3, 3), out.shape
    np.testing.assert_allclose(np.asarray(out), np.asarray(ref),
                               rtol=1e-5, atol=1e-5)
    print("KERNEL_OK")
</pallas_src>

<mosaic_0001>
module attributes {stable_mosaic.version = 11 : i64} {
  func.func @_tens_delta_kernel(%arg0: i32, %arg1: i32, %arg2: memref<8x96xf32, #tpu.memory_space<vmem>>, %arg3: memref<96x432xf32, #tpu.memory_space<vmem>>, %arg4: memref<8x432xf32, #tpu.memory_space<vmem>>) attributes {dimension_semantics = [#tpu.dimension_semantics<parallel>, #tpu.dimension_semantics<parallel>], iteration_bounds = array<i64: 2, 1>, scalar_prefetch = 0 : i64, scratch_operands = 0 : i64, tpu.core_type = #tpu.core_type<tc>, window_params = [{transform_indices = @transform_0, window_bounds = array<i64: 8, 96>}, {transform_indices = @transform_1, window_bounds = array<i64: 96, 432>}, {transform_indices = @transform_2, window_bounds = array<i64: 8, 432>}]} {
    %c0 = arith.constant 0 : index
    %c0_0 = arith.constant 0 : index
    %0 = vector.load %arg2[%c0, %c0_0] : memref<8x96xf32, #tpu.memory_space<vmem>>, vector<8x96xf32>
    %c0_1 = arith.constant 0 : index
    %c0_2 = arith.constant 0 : index
    %1 = vector.load %arg3[%c0_1, %c0_2] : memref<96x432xf32, #tpu.memory_space<vmem>>, vector<96x432xf32>
    %cst = arith.constant dense<0.000000e+00> : vector<8x432xf32>
    %2 = tpu.matmul %0, %1, %cst {dimension_numbers = #tpu.dot_dimension_numbers<[1], [0], [0], [1], [0, 0, 1, 1], [], []>} : vector<8x96xf32>, vector<96x432xf32>, vector<8x432xf32> -> vector<8x432xf32>
    %c0_3 = arith.constant 0 : index
    %c0_4 = arith.constant 0 : index
    %3 = vector.load %arg4[%c0_3, %c0_4] : memref<8x432xf32, #tpu.memory_space<vmem>>, vector<8x432xf32>
    tpu.vector_store %arg4[%c0_3, %c0_4], %2 {strides = array<i32>} : memref<8x432xf32, #tpu.memory_space<vmem>>, vector<8x432xf32>,
    return
  }
  func.func @transform_0(%arg0: i32, %arg1: i32) -> (i32, i32) {
    %c0_i32 = arith.constant 0 : i32
    %c0_i32_0 = arith.constant 0 : i32
    return %arg0, %c0_i32 : i32, i32
  }
  func.func @transform_1(%arg0: i32, %arg1: i32) -> (i32, i32) {
    %c0_i32 = arith.constant 0 : i32
    %c0_i32_0 = arith.constant 0 : i32
    return %c0_i32, %arg1 : i32, i32
  }
  func.func @transform_2(%arg0: i32, %arg1: i32) -> (i32, i32) {
    %c0_i32 = arith.constant 0 : i32
    return %arg0, %arg1 : i32, i32
  }
}

</mosaic_0001>

<bundles_post_ra>
// kernel: forward.1
= control target key start
LH: loop header
LB: loop body
LE: loop exit
PB: predicated region body
PF: predicated region fallthrough
CT: control target
= control target key end

     0   :  { %s499_s9 = smov 0   ;;  %s501_s10 = smov 0   ;;  %s690_s0 = inlined_call_operand.vmem [shape: f32[16,96], index: 0, kind: input, shape index: {}]   ;;  %s691_s1 = inlined_call_operand.vmem [shape: f32[96,432], index: 1, kind: input, shape index: {}]   ;;  %s692_s2 = inlined_call_operand.vmem [shape: f32[16,432], index: 2, kind: output, shape index: {}]  }
   0x1   :  { %s503_s11 = smov 0  }
   0x2 LB: > { %s24_s12 = sadd.s32 1, %s478_s10  ;;  %p425_p0 = scmp.ge.s32.totalorder %s482_s11, 1  ;;  %s482_s11 = sphi %s503_s11, %s12_s11   ;;  %s478_s10 = sphi %s501_s10, %s694_s10   ;;  %s474_s9 = sphi %s499_s9, %s693_s9  }
   0x3   : > { %p26_p1 = scmp.ge.s32.totalorder %s24_s12, 2  ;;  %p136_p2 = scmp.lt.s32.totalorder %s482_s11, 3 }
   0x5   : > { %s696_s12 = smov (%p26_p1, %s24_s12), 0  ;;  %p137_p3 = pnand %p425_p0, %p136_p2 }
   0x6   : > { %p166_p4 = scmp.lt.s32.totalorder (!%p137_p3), %s474_s9, 1 }
   0x7   : > { %140 = sbr.rel (%p137_p3) target bundleno = 170 (0xaa), region = 28 }
   0xc   : > { %v233_v0 = vld [vmem:[%s691_s1 + $0x170] sm:$0xff]  ;;  %v234_v1 = vld [vmem:[%s691_s1 + $0x178] sm:$0xff]  ;;  %v231_v6 = vld [vmem:[%s691_s1 + $0x160] sm:$0xff]  ;;  %s698_s9 = smov (!%p166_p4, %s474_s9), 1  ;;  %vm235_vm0 = vcmask 785408   ;;  %vm322_vm1 = vcmask 392192  }
   0xd   : > { %v229_v2 = vld [vmem:[%s691_s1 + $0x150] sm:$0xff]  ;;  %283 = vmatpush.msra.mxu2 %v233_v0  ;;  %303 = vmatpush.msra.mxu3 %v234_v1  ;;  %v230_v3 = vld [vmem:[%s691_s1 + $0x158] sm:$0xff]  ;;  %v232_v7 = vld [vmem:[%s691_s1 + $0x168] sm:$0xff]  ;;  %s426_s5 = sshll.u32 %s698_s9, 3  ;;  %s435_s17 = sshll.u32 %s698_s9, 5 }
   0xe   : > { %v225_v4 = vld [vmem:[%s691_s1 + $0x130] sm:$0xff]  ;;  %v226_v5 = vld [vmem:[%s691_s1 + $0x138] sm:$0xff]  ;;  %v227_v8 = vld [vmem:[%s691_s1 + $0x140] sm:$0xff]  ;;  %243 = vmatpush.msra.mxu0 %v231_v6  ;;  %263 = vmatpush.msra.mxu1 %v232_v7  ;;  %s169_s24 = scalar_lea.vmem %s690_s0, %s426_s5  ;;  %s184_s20 = scalar_lea.vmem %s692_s2, %s435_s17 }
   0xf   : > { %284 = vmatpush.msra.mxu2 %v229_v2  ;;  %304 = vmatpush.msra.mxu3 %v230_v3  ;;  %v228_v9 = vld [vmem:[%s691_s1 + $0x148] sm:$0xff]  ;;  %v221_v10 = vld [vmem:[%s691_s1 + $0x110] sm:$0xff]  ;;  %v222_v11 = vld [vmem:[%s691_s1 + $0x118] sm:$0xff] }
  0x10   : > { %v223_v12 = vld [vmem:[%s691_s1 + $0x120] sm:$0xff]  ;;  %v224_v13 = vld [vmem:[%s691_s1 + $0x128] sm:$0xff]  ;;  %244 = vmatpush.msra.mxu0 %v227_v8  ;;  %264 = vmatpush.msra.mxu1 %v228_v9  ;;  %v217_v14 = vld [vmem:[%s691_s1 + $0xf0] sm:$0xff] }
  0x11   : > { %285 = vmatpush.msra.mxu2 %v225_v4  ;;  %305 = vmatpush.msra.mxu3 %v226_v5  ;;  %v218_v15 = vld [vmem:[%s691_s1 + $0xf8] sm:$0xff]  ;;  %v219_v16 = vld [vmem:[%s691_s1 + $0x100] sm:$0xff]  ;;  %v220_v17 = vld [vmem:[%s691_s1 + $0x108] sm:$0xff] }
  0x12   : > { %245 = vmatpush.msra.mxu0 %v223_v12  ;;  %265 = vmatpush.msra.mxu1 %v224_v13  ;;  %v213_v18 = vld [vmem:[%s691_s1 + $0xd0] sm:$0xff]  ;;  %v214_v19 = vld [vmem:[%s691_s1 + $0xd8] sm:$0xff]  ;;  %v215_v20 = vld [vmem:[%s691_s1 + $0xe0] sm:$0xff] }
  0x13   : > { %286 = vmatpush.msra.mxu2 %v221_v10  ;;  %306 = vmatpush.msra.mxu3 %v222_v11  ;;  %v216_v21 = vld [vmem:[%s691_s1 + $0xe8] sm:$0xff]  ;;  %v209_v22 = vld [vmem:[%s691_s1 + $0xb0] sm:$0xff]  ;;  %v210_v23 = vld [vmem:[%s691_s1 + $0xb8] sm:$0xff] }
  0x14   : > { %246 = vmatpush.msra.mxu0 %v219_v16  ;;  %266 = vmatpush.msra.mxu1 %v220_v17  ;;  %v211_v24 = vld [vmem:[%s691_s1 + $0xc0] sm:$0xff]  ;;  %v212_v25 = vld [vmem:[%s691_s1 + $0xc8] sm:$0xff]  ;;  %v205_v26 = vld [vmem:[%s691_s1 + $0x90] sm:$0xff] }
  0x15   : > { %287 = vmatpush.msra.mxu2 %v217_v14  ;;  %307 = vmatpush.msra.mxu3 %v218_v15  ;;  %v206_v27 = vld [vmem:[%s691_s1 + $0x98] sm:$0xff]  ;;  %v207_v28 = vld [vmem:[%s691_s1 + $0xa0] sm:$0xff]  ;;  %v208_v29 = vld [vmem:[%s691_s1 + $0xa8] sm:$0xff] }
  0x16   : > { %247 = vmatpush.msra.mxu0 %v215_v20  ;;  %267 = vmatpush.msra.mxu1 %v216_v21  ;;  %v201_v30 = vld [vmem:[%s691_s1 + $0x70] sm:$0xff]  ;;  %v202_v31 = vld [vmem:[%s691_s1 + $0x78] sm:$0xff]  ;;  %v203_v32 = vld [vmem:[%s691_s1 + $0x80] sm:$0xff] }
  0x17   : > { %288 = vmatpush.msra.mxu2 %v213_v18  ;;  %308 = vmatpush.msra.mxu3 %v214_v19  ;;  %v204_v33 = vld [vmem:[%s691_s1 + $0x88] sm:$0xff]  ;;  %v197_v34 = vld [vmem:[%s691_s1 + $0x50] sm:$0xff]  ;;  %v198_v35 = vld [vmem:[%s691_s1 + $0x58] sm:$0xff] }
  0x18   : > { %248 = vmatpush.msra.mxu0 %v211_v24  ;;  %268 = vmatpush.msra.mxu1 %v212_v25  ;;  %v199_v36 = vld [vmem:[%s691_s1 + $0x60] sm:$0xff]  ;;  %v200_v37 = vld [vmem:[%s691_s1 + $0x68] sm:$0xff]  ;;  %v193_v38 = vld [vmem:[%s691_s1 + $0x30] sm:$0xff] }
  0x19   : > { %289 = vmatpush.msra.mxu2 %v209_v22  ;;  %309 = vmatpush.msra.mxu3 %v210_v23  ;;  %v194_v39 = vld [vmem:[%s691_s1 + $0x38] sm:$0xff]  ;;  %v195_v40 = vld [vmem:[%s691_s1 + $0x40] sm:$0xff]  ;;  %v196_v41 = vld [vmem:[%s691_s1 + $0x48] sm:$0xff] }
  0x1a   : > { %249 = vmatpush.msra.mxu0 %v207_v28  ;;  %269 = vmatpush.msra.mxu1 %v208_v29  ;;  %v189_v42 = vld [vmem:[%s691_s1 + $0x10] sm:$0xff]  ;;  %v190_v43 = vld [vmem:[%s691_s1 + $0x18] sm:$0xff]  ;;  %v186_v44 = vld [vmem:[%s169_s24] sm:$0xff] }
  0x1b   : > { %290 = vmatpush.msra.mxu2 %v205_v26  ;;  %310 = vmatpush.msra.mxu3 %v206_v27  ;;  %v191_v45 = vld [vmem:[%s691_s1 + $0x20] sm:$0xff]  ;;  %v192_v46 = vld [vmem:[%s691_s1 + $0x28] sm:$0xff] }
  0x1c   : > { %250 = vmatpush.msra.mxu0 %v203_v32  ;;  %270 = vmatpush.msra.mxu1 %v204_v33  ;;  %v187_v47 = vld [vmem:[%s691_s1] sm:$0xff]  ;;  %v188_v48 = vld [vmem:[%s691_s1 + $0x8] sm:$0xff] }
  0x1d   : > { %291 = vmatpush.msra.mxu2 %v201_v30  ;;  %311 = vmatpush.msra.mxu3 %v202_v31 }
  0x1e   : > { %251 = vmatpush.msra.mxu0 %v199_v36  ;;  %271 = vmatpush.msra.mxu1 %v200_v37 }
  0x1f   : > { %292 = vmatpush.msra.mxu2 %v197_v34  ;;  %312 = vmatpush.msra.mxu3 %v198_v35 }
  0x20   : > { %252 = vmatpush.msra.mxu0 %v195_v40  ;;  %272 = vmatpush.msra.mxu1 %v196_v41 }
  0x21   : > { %293 = vmatpush.msra.mxu2 %v193_v38  ;;  %313 = vmatpush.msra.mxu3 %v194_v39 }
  0x22   : > { %253 = vmatpush.msra.mxu0 %v191_v45  ;;  %273 = vmatpush.msra.mxu1 %v192_v46 }
  0x23   : > { %294 = vmatpush.msra.mxu2 %v189_v42  ;;  %314 = vmatpush.msra.mxu3 %v190_v43 }
  0x24   : > { %431 = vmatmul.msk.f32.vlgmr.msra.gmra.mxu2 %vm235_vm0, %v186_v44  ;;  %432 = vmatmul.msk.f32.vlgmr.msra.gmra.mxu3 %vm235_vm0, %v186_v44 }
  0x25   : > { %254 = vmatpush.msra.mxu0 %v187_v47  ;;  %274 = vmatpush.msra.mxu1 %v188_v48 }
  0x26   : > { %429 = vmatmul.msk.f32.vlgmr.msra.gmra.mxu0 %vm235_vm0, %v186_v44  ;;  %430 = vmatmul.msk.f32.vlgmr.msra.gmra.mxu1 %vm235_vm0, %v186_v44 }
  0xa3   : > { %v256_v49 = vpop.f32.mrf.mxu0  ;;  %v276_v50 = vpop.f32.mrf.mxu1 }
  0xa4   : > { %319 = vst [vmem:[%s184_s20] sm:$0xff] %v256_v49 }
  0xa5   : > { %320 = vst [vmem:[%s184_s20 + $0x8] sm:$0xff] %v276_v50 }
  0xa7   : > { %v296_v51 = vpop.f32.mrf.mxu2  ;;  %v316_v52 = vpop.f32.mrf.mxu3 }
  0xa8   : > { %321 = vst [vmem:[%s184_s20 + $0x10] sm:$0xff] %v296_v51 }
  0xa9   : > { %323 = vst.msk [vmem:[%s184_s20 + $0x18] sm:$0xff] %vm322_vm1, %v316_v52 }
  0xaa PF: > { %s12_s11 = sadd.s32 1, %s482_s11   ;;  %s693_s9 = smov %s478_s10 }
  0xab   : > { %p9_p5 = scmp.ge.s32.totalorder %s12_s11, 4   ;;  %s694_s10 = smov %s696_s12 }
  0xad   :  { %11 = sbr.rel (!%p9_p5) target bundleno = 2 (0x2), region = 61 }

</bundles_post_ra>
